<compile_context>
chip_gen: v5e
topology: v5e:2x2
jax: 0.10.0
libtpu: 0.0.40
codegen_flags: <defaults>
</compile_context>

<pallas_src>
import jax
import jax.numpy as jnp
from jax.experimental import pallas as pl
from jax.experimental.pallas import tpu as pltpu

_LANES = 128
_MAX_TILE_ROWS = 2048  # (2048,128) f32 = 1 MiB per input per pipeline buffer


def _round_up(x, m):
    return (x + m - 1) // m * m


def _cdiv(a, b):
    return -(-a // b)


def _loss_partials_kernel(g_ref, r_ref, t_ref, m_ref, sq_out_ref, msk_out_ref):
    """Accumulates per-(sublane,lane) partial sums of
       (g*m - t)^2 + (r*m - t)^2   and of   m
    across the reduction grid axis (axis 1), directly into the resident
    (1, 8, 128) output blocks."""
    t_idx = pl.program_id(1)

    @pl.when(t_idx == 0)
    def _init():
        sq_out_ref[...] = jnp.zeros_like(sq_out_ref)
        msk_out_ref[...] = jnp.zeros_like(msk_out_ref)

    # Upcast in-kernel (free on the VPU); keeps HBM traffic at native width.
    g = g_ref[...].astype(jnp.float32)
    r = r_ref[...].astype(jnp.float32)
    t = t_ref[...].astype(jnp.float32)
    m = m_ref[...].astype(jnp.float32)

    dg = g * m - t
    dr = r * m - t
    sq = dg * dg + dr * dr          # fused: single reduction instead of two

    # (tile_rows,128) -> (tile_rows//8, 8, 128) matches the native sublane
    # tiling, so the reshape is free and the axis-0 sum is pure VPU adds.
    sq_out_ref[...] += jnp.sum(sq.reshape(-1, 8, _LANES), axis=0)[None]
    msk_out_ref[...] += jnp.sum(m.reshape(-1, 8, _LANES), axis=0)[None]


def loss_with_mask(y_pred, y_true, *, max_tile_rows=_MAX_TILE_ROWS):
    """JAX/Pallas equivalent of LossWithMask(nn.MSELoss()).forward.

    y_pred = (y_pred_g, y_pred_r)        each (N, C, H, W)
    y_true = (y_true_arr, mask, size)    y_true_arr, mask: (N, C, H, W)
    Returns a float32 scalar.
    """
    y_pred_g, y_pred_r = y_pred
    y_true_arr, mask, _size = y_true

    n, c, h, w = mask.shape
    total = n * c * h * w

    # --- tiling / padding (generation-safe VMEM budget) -------------------
    rows = _cdiv(total, _LANES)
    tile_rows = min(_round_up(max_tile_rows, 8), _round_up(rows, 8))
    tiles_total = _cdiv(rows, tile_rows)
    n_split = 2 if tiles_total >= 2 else 1          # v7x: one half per core
    tiles_per_split = _cdiv(tiles_total, n_split)
    padded_rows = n_split * tiles_per_split * tile_rows
    padded_total = padded_rows * _LANES

    def flat(x):
        # Native dtype (no wrapper upcast); zero padding is exact for both
        # the squared-error sums and mask.sum().
        x = x.reshape(-1)
        if padded_total != total:
            x = jnp.pad(x, (0, padded_total - total))
        return x.reshape(padded_rows, _LANES)

    g2, r2, t2, m2 = flat(y_pred_g), flat(y_pred_r), flat(y_true_arr), flat(mask)

    in_spec = pl.BlockSpec((tile_rows, _LANES),
                           lambda p, t: (p * tiles_per_split + t, 0))
    out_spec = pl.BlockSpec((1, 8, _LANES), lambda p, t: (p, 0, 0))

    sq_partials, msk_partials = pl.pallas_call(
        _loss_partials_kernel,
        out_shape=(
            jax.ShapeDtypeStruct((n_split, 8, _LANES), jnp.float32),
            jax.ShapeDtypeStruct((n_split, 8, _LANES), jnp.float32),
        ),
        grid_spec=pltpu.PrefetchScalarGridSpec(
            num_scalar_prefetch=0,
            grid=(n_split, tiles_per_split),
            in_specs=[in_spec, in_spec, in_spec, in_spec],
            out_specs=[out_spec, out_spec],
        ),
        compiler_params=pltpu.CompilerParams(
            dimension_semantics=("parallel", "arbitrary"),
            vmem_limit_bytes=32 * 1024 * 1024,
        ),
    )(g2, r2, t2, m2)

    # Tiny epilogue: single cross-lane reduce + folded scale + 1/mask.sum().
    sum_sq = jnp.sum(sq_partials)
    mask_sum = jnp.sum(msk_partials)
    # NOTE: like the PyTorch reference, an all-zero mask yields inf/NaN.
    return sum_sq * (jnp.float32(n * c) / jnp.float32(total)) / mask_sum


def _reference(y_pred, y_true):
    """Pure-JAX reference mirroring the PyTorch forward (MSE, mean reduction)."""
    y_pred_g, y_pred_r = y_pred
    t, mask, _size = y_true
    g = y_pred_g * mask
    r = y_pred_r * mask
    loss = jnp.mean((g - t) ** 2) + jnp.mean((r - t) ** 2)
    n, c, _, _ = mask.shape
    return loss * (n * c) / jnp.sum(mask)


if __name__ == "__main__":
    def make_inputs(shape, key):
        k1, k2, k3, k4 = jax.random.split(key, 4)
        g = jax.random.normal(k1, shape, dtype=jnp.float32)
        r = jax.random.normal(k2, shape, dtype=jnp.float32)
        t = jax.random.normal(k3, shape, dtype=jnp.float32)
        m = (jax.random.uniform(k4, shape) > 0.5).astype(jnp.float32)
        size = jnp.array([shape[2], shape[3]], dtype=jnp.int32)
        return (g, r), (t, m, size)

    # Primary small case (N, C, H, W) = (2, 4, 16, 16).
    y_pred, y_true = make_inputs((2, 4, 16, 16), jax.random.PRNGKey(0))
    loss = jax.block_until_ready(loss_with_mask(y_pred, y_true))
    ref = _reference(y_pred, y_true)
    assert jnp.allclose(loss, ref, rtol=1e-5, atol=1e-5), (loss, ref)

    # Exercise the gridded accumulating path (multiple tiles, 2-way split).
    y_pred, y_true = make_inputs((2, 4, 32, 48), jax.random.PRNGKey(1))
    loss = jax.block_until_ready(loss_with_mask(y_pred, y_true, max_tile_rows=8))
    ref = _reference(y_pred, y_true)
    assert jnp.allclose(loss, ref, rtol=1e-5, atol=1e-5), (loss, ref)

    # Exercise the zero-padding path (total not a multiple of 128).
    y_pred, y_true = make_inputs((2, 3, 10, 10), jax.random.PRNGKey(2))
    loss = jax.block_until_ready(loss_with_mask(y_pred, y_true))
    ref = _reference(y_pred, y_true)
    assert jnp.allclose(loss, ref, rtol=1e-5, atol=1e-5), (loss, ref)

    print("KERNEL_OK")
</pallas_src>

<mosaic_0001>
module attributes {stable_mosaic.version = 11 : i64} {
  func.func @_loss_partials_kernel(%arg0: i32, %arg1: i32, %arg2: memref<16x128xf32, #tpu.memory_space<vmem>>, %arg3: memref<16x128xf32, #tpu.memory_space<vmem>>, %arg4: memref<16x128xf32, #tpu.memory_space<vmem>>, %arg5: memref<16x128xf32, #tpu.memory_space<vmem>>, %arg6: memref<1x8x128xf32, #tpu.memory_space<vmem>>, %arg7: memref<1x8x128xf32, #tpu.memory_space<vmem>>) attributes {dimension_semantics = [#tpu.dimension_semantics<parallel>, #tpu.dimension_semantics<arbitrary>], iteration_bounds = array<i64: 1, 1>, scalar_prefetch = 0 : i64, scratch_operands = 0 : i64, tpu.core_type = #tpu.core_type<tc>, window_params = [{transform_indices = @transform_0, window_bounds = array<i64: 16, 128>}, {transform_indices = @transform_1, window_bounds = array<i64: 16, 128>}, {transform_indices = @transform_2, window_bounds = array<i64: 16, 128>}, {transform_indices = @transform_3, window_bounds = array<i64: 16, 128>}, {transform_indices = @transform_4, window_bounds = array<i64: 1, 8, 128>}, {transform_indices = @transform_5, window_bounds = array<i64: 1, 8, 128>}]} {
    %c0_i32 = arith.constant 0 : i32
    %0 = arith.cmpi eq, %arg1, %c0_i32 : i32
    %1 = arith.extui %0 : i1 to i32
    %c0_i32_0 = arith.constant 0 : i32
    %2 = arith.cmpi ne, %1, %c0_i32_0 : i32
    scf.if %2 {
      %cst_21 = arith.constant 0.000000e+00 : f32
      %26 = vector.broadcast %cst_21 : f32 to vector<1x8x128xf32>
      %c0_22 = arith.constant 0 : index
      %c0_23 = arith.constant 0 : index
      %c0_24 = arith.constant 0 : index
      %27 = vector.load %arg6[%c0_22, %c0_23, %c0_24] : memref<1x8x128xf32, #tpu.memory_space<vmem>>, vector<1x8x128xf32>
      tpu.vector_store %arg6[%c0_22, %c0_23, %c0_24], %26 {strides = array<i32>} : memref<1x8x128xf32, #tpu.memory_space<vmem>>, vector<1x8x128xf32>,
      %cst_25 = arith.constant 0.000000e+00 : f32
      %28 = vector.broadcast %cst_25 : f32 to vector<1x8x128xf32>
      %c0_26 = arith.constant 0 : index
      %c0_27 = arith.constant 0 : index
      %c0_28 = arith.constant 0 : index
      %29 = vector.load %arg7[%c0_26, %c0_27, %c0_28] : memref<1x8x128xf32, #tpu.memory_space<vmem>>, vector<1x8x128xf32>
      tpu.vector_store %arg7[%c0_26, %c0_27, %c0_28], %28 {strides = array<i32>} : memref<1x8x128xf32, #tpu.memory_space<vmem>>, vector<1x8x128xf32>,
    } else {
    }
    %c0 = arith.constant 0 : index
    %c0_1 = arith.constant 0 : index
    %3 = vector.load %arg2[%c0, %c0_1] : memref<16x128xf32, #tpu.memory_space<vmem>>, vector<16x128xf32>
    %c0_2 = arith.constant 0 : index
    %c0_3 = arith.constant 0 : index
    %4 = vector.load %arg3[%c0_2, %c0_3] : memref<16x128xf32, #tpu.memory_space<vmem>>, vector<16x128xf32>
    %c0_4 = arith.constant 0 : index
    %c0_5 = arith.constant 0 : index
    %5 = vector.load %arg4[%c0_4, %c0_5] : memref<16x128xf32, #tpu.memory_space<vmem>>, vector<16x128xf32>
    %c0_6 = arith.constant 0 : index
    %c0_7 = arith.constant 0 : index
    %6 = vector.load %arg5[%c0_6, %c0_7] : memref<16x128xf32, #tpu.memory_space<vmem>>, vector<16x128xf32>
    %7 = arith.mulf %3, %6 : vector<16x128xf32>
    %8 = arith.subf %7, %5 : vector<16x128xf32>
    %9 = arith.mulf %4, %6 : vector<16x128xf32>
    %10 = arith.subf %9, %5 : vector<16x128xf32>
    %11 = arith.mulf %8, %8 : vector<16x128xf32>
    %12 = arith.mulf %10, %10 : vector<16x128xf32>
    %13 = arith.addf %11, %12 : vector<16x128xf32>
    %c0_8 = arith.constant 0 : index
    %c0_9 = arith.constant 0 : index
    %c0_10 = arith.constant 0 : index
    %14 = vector.load %arg6[%c0_8, %c0_9, %c0_10] : memref<1x8x128xf32, #tpu.memory_space<vmem>>, vector<1x8x128xf32>
    %15 = vector.shape_cast %13 : vector<16x128xf32> to vector<2x8x128xf32>
    %cst = arith.constant dense<0.000000e+00> : vector<8x128xf32>
    %16 = vector.multi_reduction <add>, %15, %cst [0] : vector<2x8x128xf32> to vector<8x128xf32>
    %17 = vector.shape_cast %16 : vector<8x128xf32> to vector<1x8x128xf32>
    %18 = arith.addf %14, %17 : vector<1x8x128xf32>
    %c0_11 = arith.constant 0 : index
    %c0_12 = arith.constant 0 : index
    %c0_13 = arith.constant 0 : index
    %19 = vector.load %arg6[%c0_11, %c0_12, %c0_13] : memref<1x8x128xf32, #tpu.memory_space<vmem>>, vector<1x8x128xf32>
    tpu.vector_store %arg6[%c0_11, %c0_12, %c0_13], %18 {strides = array<i32>} : memref<1x8x128xf32, #tpu.memory_space<vmem>>, vector<1x8x128xf32>,
    %c0_14 = arith.constant 0 : index
    %c0_15 = arith.constant 0 : index
    %c0_16 = arith.constant 0 : index
    %20 = vector.load %arg7[%c0_14, %c0_15, %c0_16] : memref<1x8x128xf32, #tpu.memory_space<vmem>>, vector<1x8x128xf32>
    %21 = vector.shape_cast %6 : vector<16x128xf32> to vector<2x8x128xf32>
    %cst_17 = arith.constant dense<0.000000e+00> : vector<8x128xf32>
    %22 = vector.multi_reduction <add>, %21, %cst_17 [0] : vector<2x8x128xf32> to vector<8x128xf32>
    %23 = vector.shape_cast %22 : vector<8x128xf32> to vector<1x8x128xf32>
    %24 = arith.addf %20, %23 : vector<1x8x128xf32>
    %c0_18 = arith.constant 0 : index
    %c0_19 = arith.constant 0 : index
    %c0_20 = arith.constant 0 : index
    %25 = vector.load %arg7[%c0_18, %c0_19, %c0_20] : memref<1x8x128xf32, #tpu.memory_space<vmem>>, vector<1x8x128xf32>
    tpu.vector_store %arg7[%c0_18, %c0_19, %c0_20], %24 {strides = array<i32>} : memref<1x8x128xf32, #tpu.memory_space<vmem>>, vector<1x8x128xf32>,
    return
  }
  func.func @transform_0(%arg0: i32, %arg1: i32) -> (i32, i32) {
    %c1_i32 = arith.constant 1 : i32
    %0 = arith.muli %arg0, %c1_i32 : i32
    %1 = arith.addi %0, %arg1 : i32
    %c0_i32 = arith.constant 0 : i32
    %c0_i32_0 = arith.constant 0 : i32
    return %1, %c0_i32 : i32, i32
  }
  func.func @transform_1(%arg0: i32, %arg1: i32) -> (i32, i32) {
    %c1_i32 = arith.constant 1 : i32
    %0 = arith.muli %arg0, %c1_i32 : i32
    %1 = arith.addi %0, %arg1 : i32
    %c0_i32 = arith.constant 0 : i32
    %c0_i32_0 = arith.constant 0 : i32
    return %1, %c0_i32 : i32, i32
  }
  func.func @transform_2(%arg0: i32, %arg1: i32) -> (i32, i32) {
    %c1_i32 = arith.constant 1 : i32
    %0 = arith.muli %arg0, %c1_i32 : i32
    %1 = arith.addi %0, %arg1 : i32
    %c0_i32 = arith.constant 0 : i32
    %c0_i32_0 = arith.constant 0 : i32
    return %1, %c0_i32 : i32, i32
  }
  func.func @transform_3(%arg0: i32, %arg1: i32) -> (i32, i32) {
    %c1_i32 = arith.constant 1 : i32
    %0 = arith.muli %arg0, %c1_i32 : i32
    %1 = arith.addi %0, %arg1 : i32
    %c0_i32 = arith.constant 0 : i32
    %c0_i32_0 = arith.constant 0 : i32
    return %1, %c0_i32 : i32, i32
  }
  func.func @transform_4(%arg0: i32, %arg1: i32) -> (i32, i32, i32) {
    %c0_i32 = arith.constant 0 : i32
    %c0_i32_0 = arith.constant 0 : i32
    %c0_i32_1 = arith.constant 0 : i32
    return %arg0, %c0_i32, %c0_i32_0 : i32, i32, i32
  }
  func.func @transform_5(%arg0: i32, %arg1: i32) -> (i32, i32, i32) {
    %c0_i32 = arith.constant 0 : i32
    %c0_i32_0 = arith.constant 0 : i32
    %c0_i32_1 = arith.constant 0 : i32
    return %arg0, %c0_i32, %c0_i32_0 : i32, i32, i32
  }
}

</mosaic_0001>

<bundles_post_ra>
// kernel: tpu_custom_call.1
= control target key start
LH: loop header
LB: loop body
LE: loop exit
PB: predicated region body
PF: predicated region fallthrough
CT: control target
= control target key end

     0   :  { %11 = vsyncpa [#allocation3], 0  ;;  %s398_s0 = inlined_call_operand.hbm [shape: f32[16,128], index: 0, kind: input, shape index: {}]   ;;  %s399_s1 = inlined_call_operand.hbm [shape: f32[16,128], index: 1, kind: input, shape index: {}]   ;;  %s400_s2 = inlined_call_operand.hbm [shape: f32[16,128], index: 2, kind: input, shape index: {}]   ;;  %s401_s3 = inlined_call_operand.hbm [shape: f32[16,128], index: 3, kind: input, shape index: {}]   ;;  %s402_s4 = inlined_call_operand.hbm [shape: f32[1,8,128], index: 4, kind: output, shape index: {0}]   ;;  %s403_s5 = inlined_call_operand.hbm [shape: f32[1,8,128], index: 5, kind: output, shape index: {1}]  }
   0x1   :  { %12 = vsyncpa [#allocation6], 0 }
   0x2   :  { %13 = vsyncpa [#allocation9], 0 }
   0x3   :  { %14 = vsyncpa [#allocation4], 0 }
   0x4   :  { %15 = vsyncpa [#allocation12], 0  ;;  %s41_s20 = sshll.u32 %s399_s1, 4  ;;  %s342_s21 = smov [#allocation5]   ;;  %s42_s20 = int_to_ptr.hbm [resolvable:$true] %s41_s20 }
   0x5   :  { %s43_s22 = sshll.u32 %s342_s21, 4  ;;  %s24_s25 = sshll.u32 %s398_s0, 4  ;;  %s44_s22 = int_to_ptr.vmem [resolvable:$true] %s43_s22  ;;  %s25_s25 = int_to_ptr.hbm [resolvable:$true] %s24_s25 }
   0x6   :  { %s343_s26 = smov 128   ;;  %s344_s27 = smov 8  }
   0x7   :  { %49 = dma.hbm_to_vmem [thread:$0]  %s42_s20, 256, %s44_s22, [#allocation6], %s343_s26, %s343_s26, %s344_s27  }
   0x8   :  { %s345_s28 = smov [#allocation2]   ;;  %s58_s7 = sshll.u32 %s400_s2, 4  ;;  %s59_s7 = int_to_ptr.hbm [resolvable:$true] %s58_s7 }
   0x9   :  { %s26_s29 = sshll.u32 %s345_s28, 4  ;;  %s75_s9 = sshll.u32 %s401_s3, 4  ;;  %s27_s29 = int_to_ptr.vmem [resolvable:$true] %s26_s29  ;;  %s76_s9 = int_to_ptr.hbm [resolvable:$true] %s75_s9 }
   0xa   :  { %32 = dma.hbm_to_vmem [thread:$0]  %s25_s25, 256, %s27_s29, [#allocation3], %s343_s26, %s343_s26, %s344_s27  }
   0xb   :  { %s346_s10 = smov [#allocation7]   ;;  %s347_s0 = smov [#allocation8]  }
   0xc   :  { %s60_s11 = sshll.u32 %s346_s10, 4  ;;  %s77_s12 = sshll.u32 %s347_s0, 4  ;;  %s61_s11 = int_to_ptr.vmem [resolvable:$true] %s60_s11  ;;  %s78_s12 = int_to_ptr.vmem [resolvable:$true] %s77_s12 }
   0xd   :  { %66 = dma.hbm_to_vmem [thread:$0]  %s59_s7, 256, %s61_s11, [#allocation6], %s343_s26, %s343_s26, %s344_s27  }
   0xe   :  { %83 = dma.hbm_to_vmem [thread:$0]  %s76_s9, 256, %s78_s12, [#allocation9], %s343_s26, %s343_s26, %s344_s27  }
   0xf   :  { %332 = dma.done.wait [#allocation3], 256  }
  0x10   :  { %333 = vsyncadd [#allocation3], 4294967040 }
  0x11   :  { %334 = dma.done.wait [#allocation6], 512  }
  0x12   :  { %335 = vsyncadd [#allocation6], 4294966784 }
  0x13   :  { %336 = dma.done.wait [#allocation9], 256  }
  0x14   :  { %337 = vsyncadd [#allocation9], 4294967040  ;;  %v114_v0 = vld [vmem:[#allocation2] sm:$0xff]  ;;  %v115_v1 = vld [vmem:[#allocation2 + $0x8] sm:$0xff]  ;;  %s348_s2 = smov [#allocation11]   ;;  %s162_s15 = sshll.u32 %s403_s5, 4  ;;  %s163_s15 = int_to_ptr.hbm [resolvable:$true] %s162_s15 }
  0x15   :  { %v116_v2 = vld [vmem:[#allocation5] sm:$0xff]  ;;  %v117_v3 = vld [vmem:[#allocation5 + $0x8] sm:$0xff]  ;;  %v118_v4 = vld [vmem:[#allocation7] sm:$0xff]  ;;  %s160_s3 = sshll.u32 %s348_s2, 4  ;;  %s349_s16 = smov [#allocation10]   ;;  %s161_s3 = int_to_ptr.vmem [resolvable:$true] %s160_s3 }
  0x16   :  { %v119_v5 = vld [vmem:[#allocation7 + $0x8] sm:$0xff]  ;;  %v120_v6 = vld [vmem:[#allocation8] sm:$0xff]  ;;  %v121_v7 = vld [vmem:[#allocation8 + $0x8] sm:$0xff]  ;;  %s149_s17 = sshll.u32 %s349_s16, 4  ;;  %s151_s5 = sshll.u32 %s402_s4, 4  ;;  %s150_s17 = int_to_ptr.vmem [resolvable:$true] %s149_s17  ;;  %s152_s5 = int_to_ptr.hbm [resolvable:$true] %s151_s5 }
  0x17   :  { %v122_v8 = vmul.f32 %v120_v6, %v114_v0  ;;  %v123_v9 = vmul.f32 %v121_v7, %v115_v1  ;;  %v126_v10 = vmul.f32 %v120_v6, %v116_v2  ;;  %v127_v11 = vmul.f32 %v121_v7, %v117_v3 }
  0x18   :  { %v141_v12 = vadd.f32 %v121_v7, %v120_v6 }
  0x19   :  { %v124_v13 = vsub.f32 %v122_v8, %v118_v4  ;;  %v125_v14 = vsub.f32 %v123_v9, %v119_v5  ;;  %v128_v15 = vsub.f32 %v126_v10, %v118_v4  ;;  %v129_v16 = vsub.f32 %v127_v11, %v119_v5 }
  0x1a   :  { %143 = vst [vmem:[#allocation11] sm:$0xff] %v141_v12 }
  0x1b   :  { %v130_v17 = vmul.f32 %v124_v13, %v124_v13  ;;  %v131_v18 = vmul.f32 %v125_v14, %v125_v14  ;;  %v132_v19 = vmul.f32 %v128_v15, %v128_v15  ;;  %v133_v20 = vmul.f32 %v129_v16, %v129_v16  ;;  %165 = dma.vmem_to_hbm [thread:$0]  %s161_s3, 128, %s163_s15, [#allocation12]  }
  0x1d   :  { %v134_v21 = vadd.f32 %v132_v19, %v130_v17  ;;  %v135_v22 = vadd.f32 %v133_v20, %v131_v18 }
  0x1f   :  { %v137_v23 = vadd.f32 %v135_v22, %v134_v21 }
  0x21   :  { %139 = vst [vmem:[#allocation10] sm:$0xff] %v137_v23 }
  0x22   :  { %154 = dma.vmem_to_hbm [thread:$0]  %s150_s17, 128, %s152_s5, [#allocation4]  }
  0x23   :  { %338 = dma.done.wait [#allocation4], 128  }
  0x24   :  { %339 = vsyncadd [#allocation4], 4294967168 }
  0x25   :  { %340 = dma.done.wait [#allocation12], 128  }
  0x26   :  { %341 = vsyncadd [#allocation12], 4294967168 }
  0x27   :  { %174 = vsyncpa [#allocation3], 1 }
  0x28   :  { %175 = vsyncpa [#allocation6], 1 }
  0x29   :  { %176 = vsyncpa [#allocation9], 1 }
  0x2a   :  { %177 = vsyncpa [#allocation4], 1 }
  0x2b   :  { %178 = vsyncpa [#allocation12], 1 }

</bundles_post_ra>
